<compile_context>
chip_gen: v5e
topology: v5e:2x2
jax: 0.10.0
libtpu: 0.0.40
codegen_flags: <defaults>
</compile_context>

<pallas_src>
import math

import jax
import jax.numpy as jnp
from jax.experimental import pallas as pl
from jax.experimental.pallas import tpu as pltpu

# ----------------------------------------------------------------------------
# Constants implied by the module's setup code.  `choose` is given; `t` and `x`
# are external in the original script, so we pick small deterministic sizes.
# ----------------------------------------------------------------------------
CHOOSE = 200           # prediction / h_data rows
T_NUM = 8              # len(t)
X_NUM = 16             # len(x)
TOTAL = X_NUM * T_NUM  # divisor used by the loss (constant, == 128)

_INV_TOTAL = 1.0 / TOTAL
_MAX_BBLK = 1024       # batch rows per grid step (~1 MiB f32 block at n=200)


# ----------------------------------------------------------------------------
# Kernels.  Per grid step: one (BBLK, n) prediction block, per-row reduction,
# one lane-dense (1, BBLK) store.  Accumulation always in float32.
# ----------------------------------------------------------------------------
def _sq_sum_kernel(pred_ref, out_ref):
    """Fast path (h_data is the module's zeros buffer): sum(pred^2) / TOTAL."""
    x = pred_ref[...].astype(jnp.float32)                 # (bblk, n)
    s = jnp.sum(x * x, axis=-1)                           # (bblk,) per-row
    out_ref[...] = (s * jnp.float32(_INV_TOTAL))[None, :]  # lane-dense (1,bblk)


def _sq_diff_sum_kernel(pred_ref, h_ref, out_ref):
    """General path: sum((pred - h_data)^2) / TOTAL.

    h_ref block is either (bblk, n) (per-row target) or (1, n) (shared target;
    constant index_map -> DMA'd once, broadcast fuses into the subtract).
    """
    x = pred_ref[...].astype(jnp.float32)
    h = h_ref[...].astype(jnp.float32)
    d = x - h
    s = jnp.sum(d * d, axis=-1)
    out_ref[...] = (s * jnp.float32(_INV_TOTAL))[None, :]


# ----------------------------------------------------------------------------
# Wrapper helpers.
# ----------------------------------------------------------------------------
def _flatten(a: jax.Array) -> jax.Array:
    """(B, ...) -> (B, n), keeping bf16/f16/f32 dtypes (no forced upcast)."""
    b = a.shape[0]
    n = max(1, math.prod(a.shape[1:]))
    flat = a.reshape(b, n)
    if not jnp.issubdtype(flat.dtype, jnp.floating):
        flat = flat.astype(jnp.float32)
    return flat


def pinn_loss_batched(predictions: jax.Array, h_data=None, *,
                      block_rows: int = _MAX_BBLK) -> jax.Array:
    """Batched PINN loss: one pallas_call, grid over batch chunks.

    predictions: (B, choose, 1) (any trailing shape is accepted and flattened).
    h_data: None (module's zeros buffer -> single-input fast path), or an array
            of shape predictions.shape (per-row target) or predictions.shape[1:]
            (shared target, DMA'd once via a constant index_map).
    Returns (B,) losses, float32.
    """
    b = predictions.shape[0]
    pred = _flatten(predictions)
    n = pred.shape[1]
    itemsize = pred.dtype.itemsize

    if b <= block_rows:
        bblk, steps = b, 1                 # block == full array: always legal
    else:
        # Multi-step: bblk multiple of 128 keeps both the (bblk, n) input block
        # and the (1, bblk) output block layout-legal, and gives >=2 grid steps
        # so v7x's two TensorCores both get work.
        if block_rows % 128 != 0:
            raise ValueError("block_rows must be a multiple of 128 when B > block_rows")
        bblk, steps = block_rows, pl.cdiv(b, block_rows)

    pred_spec = pl.BlockSpec((bblk, n), lambda i: (i, 0))
    out_spec = pl.BlockSpec((1, bblk), lambda i: (0, i))
    out_shape = jax.ShapeDtypeStruct((1, steps * bblk), jnp.float32)

    if h_data is None:
        kernel = _sq_sum_kernel
        args = (pred,)
        in_specs = [pred_spec]
        cost = pl.CostEstimate(
            flops=2 * b * n, transcendentals=0,
            bytes_accessed=b * n * itemsize + b * 4)
    else:
        if h_data.shape == predictions.shape:
            h = _flatten(h_data)
            h_spec = pl.BlockSpec((bblk, n), lambda i: (i, 0))
            h_bytes = b * n * h.dtype.itemsize
        elif tuple(h_data.shape) == tuple(predictions.shape[1:]):
            h = _flatten(h_data[None])                      # (1, n) shared target
            h_spec = pl.BlockSpec((1, n), lambda i: (0, 0))  # DMA'd once, reused
            h_bytes = n * h.dtype.itemsize
        else:
            raise ValueError(
                f"h_data shape {h_data.shape} must equal predictions.shape "
                f"{predictions.shape} or predictions.shape[1:] {predictions.shape[1:]}")
        kernel = _sq_diff_sum_kernel
        args = (pred, h)
        in_specs = [pred_spec, h_spec]
        cost = pl.CostEstimate(
            flops=3 * b * n, transcendentals=0,
            bytes_accessed=b * n * itemsize + b * 4 + h_bytes)

    out = pl.pallas_call(
        kernel,
        out_shape=out_shape,
        grid=(steps,),
        in_specs=in_specs,
        out_specs=out_spec,
        cost_estimate=cost,
        compiler_params=pltpu.CompilerParams(
            dimension_semantics=("parallel",)),
    )(*args)
    # Trailing (steps*bblk - b) slots of the last block come from clipped
    # (unspecified) input rows; slice them away.
    return out.reshape(-1)[:b]


def pinn_loss(prediction: jax.Array, h_data=None) -> jax.Array:
    """PINNLossFunc.forward: sum((prediction - h_data)^2) / total.

    The module fixes self.h_data to a zeros buffer, so the default path
    (h_data=None) computes sum(prediction^2) / total with a single input DMA.
    """
    return pinn_loss_batched(prediction[None], h_data)[0]


if __name__ == "__main__":
    key = jax.random.PRNGKey(0)
    k_pred, k_h, k_batch, k_big = jax.random.split(key, 4)

    # --- Module-faithful single evaluation: h_data is the zeros buffer. ------
    prediction = jax.random.normal(k_pred, (CHOOSE, 1), dtype=jnp.float32)
    h_zeros = jnp.zeros((CHOOSE, 1), dtype=jnp.float32)   # h_data_choose

    mse = jax.block_until_ready(pinn_loss(prediction))    # fast path: no h DMA
    ref = jnp.sum((prediction - h_zeros) ** 2) / TOTAL
    assert jnp.allclose(mse, ref, rtol=1e-5, atol=1e-5), (mse, ref)

    # --- General path: explicit (nonzero) shared h_data target. --------------
    h_data = jax.random.normal(k_h, (CHOOSE, 1), dtype=jnp.float32)
    mse2 = jax.block_until_ready(pinn_loss(prediction, h_data))
    ref2 = jnp.sum((prediction - h_data) ** 2) / TOTAL
    assert jnp.allclose(mse2, ref2, rtol=1e-5, atol=1e-5), (mse2, ref2)

    # --- Batched path: several predictions vs. a shared target, one call. ----
    B = 4
    preds = jax.random.normal(k_batch, (B, CHOOSE, 1), dtype=jnp.float32)
    mses = jax.block_until_ready(pinn_loss_batched(preds, h_data))
    refs = jnp.sum((preds - h_data[None]) ** 2, axis=(1, 2)) / TOTAL
    assert jnp.allclose(mses, refs, rtol=1e-5, atol=1e-5), (mses, refs)

    # --- bf16 inputs (HBM-traffic halving path): f32 accumulation in-kernel. -
    preds_bf16 = preds.astype(jnp.bfloat16)
    mses_bf16 = jax.block_until_ready(pinn_loss_batched(preds_bf16))
    refs_bf16 = jnp.sum(preds_bf16.astype(jnp.float32) ** 2, axis=(1, 2)) / TOTAL
    assert jnp.allclose(mses_bf16, refs_bf16, rtol=1e-3, atol=1e-3), (mses_bf16, refs_bf16)

    # --- Multi-step grid + clipped (non-divisible) last block. ---------------
    BB = 260
    preds_big = jax.random.normal(k_big, (BB, CHOOSE, 1), dtype=jnp.float32)
    mses_big = jax.block_until_ready(
        pinn_loss_batched(preds_big, block_rows=128))      # 3 grid steps
    refs_big = jnp.sum(preds_big ** 2, axis=(1, 2)) / TOTAL
    assert jnp.allclose(mses_big, refs_big, rtol=1e-5, atol=1e-5), (mses_big, refs_big)

    print("KERNEL_OK")
</pallas_src>

<mosaic_0001>
module attributes {stable_mosaic.version = 11 : i64} {
  func.func @_sq_sum_kernel(%arg0: i32, %arg1: memref<1x200xf32, #tpu.memory_space<vmem>>, %arg2: memref<1x1xf32, #tpu.memory_space<vmem>>) attributes {dimension_semantics = [#tpu.dimension_semantics<parallel>], iteration_bounds = array<i64: 1>, scalar_prefetch = 0 : i64, scratch_operands = 0 : i64, tpu.core_type = #tpu.core_type<tc>, window_params = [{transform_indices = @transform_0, window_bounds = array<i64: 1, 200>}, {transform_indices = @transform_1, window_bounds = array<i64: 1, 1>}]} {
    %c0 = arith.constant 0 : index
    %c0_0 = arith.constant 0 : index
    %0 = vector.load %arg1[%c0, %c0_0] : memref<1x200xf32, #tpu.memory_space<vmem>>, vector<1x200xf32>
    %1 = arith.mulf %0, %0 : vector<1x200xf32>
    %cst = arith.constant dense<0.000000e+00> : vector<1xf32>
    %2 = vector.multi_reduction <add>, %1, %cst [1] : vector<1x200xf32> to vector<1xf32>
    %cst_1 = arith.constant 7.812500e-03 : f32
    %3 = vector.broadcast %cst_1 : f32 to vector<1xf32>
    %4 = arith.mulf %2, %3 : vector<1xf32>
    %5 = vector.shape_cast %4 : vector<1xf32> to vector<1x1xf32>
    %c0_2 = arith.constant 0 : index
    %c0_3 = arith.constant 0 : index
    %6 = vector.load %arg2[%c0_2, %c0_3] : memref<1x1xf32, #tpu.memory_space<vmem>>, vector<1x1xf32>
    tpu.vector_store %arg2[%c0_2, %c0_3], %5 {strides = array<i32>} : memref<1x1xf32, #tpu.memory_space<vmem>>, vector<1x1xf32>,
    return
  }
  func.func @transform_0(%arg0: i32) -> (i32, i32) {
    %c0_i32 = arith.constant 0 : i32
    %c0_i32_0 = arith.constant 0 : i32
    return %arg0, %c0_i32 : i32, i32
  }
  func.func @transform_1(%arg0: i32) -> (i32, i32) {
    %c0_i32 = arith.constant 0 : i32
    %c0_i32_0 = arith.constant 0 : i32
    return %c0_i32, %arg0 : i32, i32
  }
}

</mosaic_0001>

<bundles_post_ra>
// kernel: tpu_custom_call.1
= control target key start
LH: loop header
LB: loop body
LE: loop exit
PB: predicated region body
PF: predicated region fallthrough
CT: control target
= control target key end

     0   :  { %6 = vsyncpa [#allocation3], 0  ;;  %s129_s0 = inlined_call_operand.hbm [shape: f32[1,200], index: 0, kind: input, shape index: {}]   ;;  %s130_s1 = inlined_call_operand.hbm [shape: f32[1,1], index: 1, kind: output, shape index: {}]  }
   0x1   :  { %7 = vsyncpa [#allocation4], 0  ;;  %s13_s8 = sshll.u32 %s129_s0, 4  ;;  %s111_s9 = smov [#allocation2]   ;;  %s14_s8 = int_to_ptr.hbm [resolvable:$true] %s13_s8 }
   0x2   :  { %s15_s10 = sshll.u32 %s111_s9, 4  ;;  %s16_s10 = int_to_ptr.vmem [resolvable:$true] %s15_s10 }
   0x3   :  { %18 = dma.hbm_to_vmem [thread:$0]  %s14_s8, 32, %s16_s10, [#allocation3]  }
   0x4   :  { %107 = dma.done.wait [#allocation3], 32  }
   0x5   :  { %108 = vsyncadd [#allocation3], 4294967264  ;;  %v23_v0 = vld [vmem:[#allocation2] sm:$0x3]  ;;  %vm30_vm0 = vcmask 1040384   ;;  %vm32_vm1 = vcmask 581632  }
   0x6   :  { %v24_v1 = vmul.f32 %v23_v0, %v23_v0  ;;  %s112_s11 = smov [#allocation5]   ;;  %s47_s14 = sshll.u32 %s130_s1, 4  ;;  %vm38_vm2 = vcmask 0   ;;  %s48_s14 = int_to_ptr.hbm [resolvable:$true] %s47_s14 }
   0x7   :  { %s45_s12 = sshll.u32 %s112_s11, 4  ;;  %s46_s12 = int_to_ptr.vmem [resolvable:$true] %s45_s12 }
   0x8   :  { %v26_v2 = vperm.slane %v24_v1, 0  ;;  %v27_v3 = vperm.slane %v24_v1, 1 }
   0xa   :  { %v31_v4 = vsel %vm30_vm0, %v26_v2, 0.0  ;;  %v33_v5 = vsel %vm32_vm1, %v27_v3, 0.0 }
   0xb   :  { %v34_v6 = vadd.f32 %v33_v5, %v31_v4 }
   0xd   :  { %35 = vadd.xlane.f32.xlu0 %v34_v6 }
  0x80   :  { %v36_v7 = vpop.xlane.xlu0 %35 }
  0x81   :  { %v37_v8 = vmul.f32 0.0078125, %v36_v7 }
  0x83   :  { %39 = vst.msk [vmem:[#allocation5] sm:$0x1] %vm38_vm2, %v37_v8 }
  0x84   :  { %50 = dma.vmem_to_hbm [thread:$0]  %s46_s12, 16, %s48_s14, [#allocation4]  }
  0x85   :  { %109 = dma.done.wait [#allocation4], 16  }
  0x86   :  { %110 = vsyncadd [#allocation4], 4294967280 }
  0x87   :  { %55 = vsyncpa [#allocation3], 1 }
  0x88   :  { %56 = vsyncpa [#allocation4], 1 }

</bundles_post_ra>
